<compile_context>
chip_gen: v6e
topology: v6e:2x2x1
jax: 0.10.0
libtpu: 0.0.40
codegen_flags: <defaults>
</compile_context>

<pallas_src>
import functools

import jax
import jax.numpy as jnp
from jax.experimental import pallas as pl
from jax.experimental.pallas import tpu as pltpu


# ------------------------------ kernel ------------------------------------- #

def _ce_kernel(yhat_ref, y_ref, loss_ref, m_ref, l_ref, sy_ref, syx_ref,
               *, num_classes, block_c):
    """Online (flash-style) soft-label cross entropy over C chunks."""
    c_step = pl.program_id(1)

    @pl.when(c_step == 0)
    def _init():
        m_ref[...] = jnp.full(m_ref.shape, -jnp.inf, jnp.float32)
        l_ref[...] = jnp.zeros(l_ref.shape, jnp.float32)
        sy_ref[...] = jnp.zeros(sy_ref.shape, jnp.float32)
        syx_ref[...] = jnp.zeros(syx_ref.shape, jnp.float32)

    x_nat = yhat_ref[...]                        # [TN, TC] native dtype
    y_nat = y_ref[...]
    x = x_nat.astype(jnp.float32)
    y = y_nat.astype(jnp.float32)

    if num_classes % block_c != 0:
        # Ragged last C chunk: mask out-of-range classes (garbage columns).
        col = jax.lax.broadcasted_iota(jnp.int32, x.shape, 1) + c_step * block_c
        valid = col < num_classes
        x_red = jnp.where(valid, x, -jnp.inf)            # for max / exp
        m_chunk = jnp.max(x_red, axis=-1, keepdims=True)
        yx = jnp.where(valid, y * x, 0.0)
        y_sum = jnp.sum(jnp.where(valid, y, 0.0), axis=-1, keepdims=True)
    else:
        x_red = x
        # Max on the native dtype is exact (select, then exact upcast).
        m_chunk = jnp.max(x_nat, axis=-1, keepdims=True).astype(jnp.float32)
        yx = y * x
        y_sum = jnp.sum(y, axis=-1, keepdims=True)

    m_prev = m_ref[...]
    m_new = jnp.maximum(m_prev, m_chunk)
    alpha = jnp.exp(m_prev - m_new)                       # [TN,1] correction
    p_sum = jnp.sum(jnp.exp(x_red - m_new), axis=-1, keepdims=True)
    l_ref[...] = alpha * l_ref[...] + p_sum
    sy_ref[...] = sy_ref[...] + y_sum
    syx_ref[...] = syx_ref[...] + jnp.sum(yx, axis=-1, keepdims=True)
    m_ref[...] = m_new

    @pl.when(c_step == pl.num_programs(1) - 1)
    def _finalize():
        lse = m_ref[...] + jnp.log(l_ref[...])            # [TN,1]
        loss = sy_ref[...] * lse - syx_ref[...]           # [TN,1]
        # Lane-dense store: a [1, 1, TN] row (no masked column stores).
        loss_ref[...] = loss[:, 0][None, None, :].astype(loss_ref.dtype)


# ------------------------------ sizing ------------------------------------- #

def _device_kind():
    try:
        return jax.devices()[0].device_kind.lower()
    except Exception:
        return ""


def _vmem_limit_bytes(kind):
    """Scoped VMEM limit per TPU generation (headroom below physical)."""
    if "v7" in kind:
        return 48 << 20            # 64 MiB/TC physical on v7x
    if any(tag in kind for tag in ("v4", "v5", "v6")):
        return 96 << 20            # 128 MiB physical VMEM
    return 32 << 20                # conservative default


def _round_up(x, m):
    return ((x + m - 1) // m) * m


def _round_down(x, m):
    return (x // m) * m


# Amortize ~0.35 us per grid step: target roughly this much input DMA per step.
_TARGET_STEP_BYTES = 16 << 20


def _choose_blocks(n, c, isz_yhat, isz_y, vmem_budget, is_v7x):
    """Pick (block_n, block_c): largest roofline-friendly slabs within budget."""
    # Sublane packing granule from the *narrowest* input dtype.
    granule = max(8, 32 // max(1, min(isz_yhat, isz_y)))
    n_up = _round_up(n, granule)

    in_bytes = isz_yhat + isz_y                    # HBM bytes per (row, class)
    # VMEM per (row, class) per step: 2 pipeline buffers per input + ~3 f32 temps.
    per_cell = 2 * in_bytes + 3 * 4

    # --- classes axis: keep the full C slab if a minimum-height tile fits ---
    if granule * c * per_cell <= vmem_budget:
        block_c = c
    else:
        block_c = _round_down(vmem_budget // (granule * per_cell), 128)
        block_c = max(128, min(block_c, _round_up(c, 128)))
    num_c = pl.cdiv(c, block_c)

    # --- rows axis: bytes-per-step target, bounded by the VMEM budget ---
    bn_vmem = max(granule, vmem_budget // (block_c * per_cell))
    bn_dma = max(granule, pl.cdiv(_TARGET_STEP_BYTES, block_c * in_bytes))
    bn = min(bn_vmem, bn_dma)
    bn = min(bn, n_up)

    # Generation-aware grid-step policy (N axis is the "parallel" one).
    if is_v7x:
        # Keep both TensorCores busy: >= 2 (prefer 4 when large) N blocks.
        if n_up >= 2 * granule:
            want = 4 if n_up >= 4 * 128 else 2
            bn = min(bn, max(granule, pl.cdiv(n_up, want)))
    else:
        # Single TensorCore: only need >= 2 total steps for DMA/compute overlap.
        if num_c == 1 and n_up >= 2 * granule:
            bn = min(bn, max(granule, pl.cdiv(n_up, 2)))

    # Align to layout granules (128 keeps the [1,1,bn] loss row lane-dense).
    if bn >= 128:
        bn = _round_down(bn, 128)
    else:
        bn = max(granule, _round_down(bn, granule))
    return int(bn), int(block_c)


# ------------------------------ wrapper ------------------------------------ #

@functools.partial(jax.jit, static_argnames=("reduction", "block_n", "block_c"))
def cross_entropy_with_logits(yhat, y, *, reduction="none",
                              block_n=None, block_c=None):
    assert reduction in ("none", "mean", "sum")
    assert yhat.ndim == 2 and yhat.shape == y.shape
    n, c = yhat.shape

    kind = _device_kind()
    vmem_limit = _vmem_limit_bytes(kind)
    is_v7x = "v7" in kind
    isz_yhat = jnp.dtype(yhat.dtype).itemsize
    isz_y = jnp.dtype(y.dtype).itemsize
    bn, bc = _choose_blocks(n, c, isz_yhat, isz_y, int(vmem_limit * 0.8), is_v7x)
    if block_n is not None:
        bn = int(block_n)
    if block_c is not None:
        bc = int(block_c)

    num_n = pl.cdiv(n, bn)         # ragged last N block: no jnp.pad, Pallas masks
    num_c = pl.cdiv(c, bc)

    kernel = functools.partial(_ce_kernel, num_classes=c, block_c=bc)

    loss = pl.pallas_call(
        kernel,
        out_shape=jax.ShapeDtypeStruct((num_n, 1, bn), jnp.float32),
        grid_spec=pltpu.PrefetchScalarGridSpec(
            num_scalar_prefetch=0,
            grid=(num_n, num_c),
            in_specs=[
                pl.BlockSpec((bn, bc), lambda i, j: (i, j)),
                pl.BlockSpec((bn, bc), lambda i, j: (i, j)),
            ],
            out_specs=pl.BlockSpec((1, 1, bn), lambda i, j: (i, 0, 0)),
            scratch_shapes=[
                pltpu.VMEM((bn, 1), jnp.float32),   # running max m
                pltpu.VMEM((bn, 1), jnp.float32),   # running sum exp(x - m)
                pltpu.VMEM((bn, 1), jnp.float32),   # running sum(y)
                pltpu.VMEM((bn, 1), jnp.float32),   # running sum(y * x)
            ],
        ),
        compiler_params=pltpu.CompilerParams(
            dimension_semantics=("parallel", "arbitrary"),
            vmem_limit_bytes=vmem_limit,
        ),
    )(yhat, y)

    # Discard padded garbage rows BEFORE any reduction.
    loss = loss.reshape(-1)[:n]    # [N], matches PyTorch reduction='none'
    if reduction == "sum":
        return jnp.sum(loss)
    if reduction == "mean":
        return jnp.mean(loss)
    return loss


# ------------------------------ reference / test ---------------------------- #

def _reference(yhat, y, reduction="none"):
    logp = jax.nn.log_softmax(yhat.astype(jnp.float32), axis=-1)
    loss = jnp.sum(-y.astype(jnp.float32) * logp, axis=1)
    if reduction == "sum":
        return jnp.sum(loss)
    if reduction == "mean":
        return jnp.mean(loss)
    return loss


if __name__ == "__main__":
    key = jax.random.PRNGKey(0)
    k1, k2, k3, k4, k5, k6 = jax.random.split(key, 6)

    ok = True

    # Case 1: small f32 problem, all reductions (exercises >=2-step N split).
    N, C = 16, 128
    yhat = jax.random.normal(k1, (N, C), dtype=jnp.float32)
    y = jax.nn.softmax(jax.random.normal(k2, (N, C), dtype=jnp.float32), axis=-1)
    for reduction in ("none", "sum", "mean"):
        out = jax.block_until_ready(cross_entropy_with_logits(yhat, y, reduction=reduction))
        ref = _reference(yhat, y, reduction=reduction)
        if not jnp.allclose(out, ref, atol=1e-5, rtol=1e-5):
            ok = False
            print(f"MISMATCH f32 reduction={reduction}")

    # Case 2: bf16 inputs + ragged batch (exercises the no-pad partial N block).
    N2, C2 = 40, 256
    yhat_b = jax.random.normal(k3, (N2, C2), dtype=jnp.float32).astype(jnp.bfloat16)
    y_b = jax.nn.softmax(
        jax.random.normal(k4, (N2, C2), dtype=jnp.float32), axis=-1
    ).astype(jnp.bfloat16)
    for reduction in ("none", "mean"):
        out = jax.block_until_ready(cross_entropy_with_logits(yhat_b, y_b, reduction=reduction))
        ref = _reference(yhat_b, y_b, reduction=reduction)
        if not jnp.allclose(out, ref, atol=1e-4, rtol=1e-4):
            ok = False
            print(f"MISMATCH bf16 reduction={reduction}")

    # Case 3: force the online-LSE C split (ragged C chunks + ragged N chunks).
    N3, C3 = 20, 320
    yhat_s = jax.random.normal(k5, (N3, C3), dtype=jnp.float32)
    y_s = jax.nn.softmax(jax.random.normal(k6, (N3, C3), dtype=jnp.float32), axis=-1)
    out = jax.block_until_ready(
        cross_entropy_with_logits(yhat_s, y_s, reduction="none", block_n=8, block_c=128))
    ref = _reference(yhat_s, y_s, reduction="none")
    if not jnp.allclose(out, ref, atol=1e-5, rtol=1e-5):
        ok = False
        print("MISMATCH f32 C-split")

    if ok:
        print("KERNEL_OK")
</pallas_src>

<mosaic_0001>
module attributes {stable_mosaic.version = 11 : i64} {
  func.func @_ce_kernel(%arg0: i32, %arg1: i32, %arg2: memref<8x128xf32, #tpu.memory_space<vmem>>, %arg3: memref<8x128xf32, #tpu.memory_space<vmem>>, %arg4: memref<1x1x8xf32, #tpu.memory_space<vmem>>, %arg5: memref<8x1xf32, #tpu.memory_space<vmem>>, %arg6: memref<8x1xf32, #tpu.memory_space<vmem>>, %arg7: memref<8x1xf32, #tpu.memory_space<vmem>>, %arg8: memref<8x1xf32, #tpu.memory_space<vmem>>) attributes {dimension_semantics = [#tpu.dimension_semantics<parallel>, #tpu.dimension_semantics<arbitrary>], iteration_bounds = array<i64: 2, 1>, scalar_prefetch = 0 : i64, scratch_operands = 4 : i64, tpu.core_type = #tpu.core_type<tc>, window_params = [{transform_indices = @transform_0, window_bounds = array<i64: 8, 128>}, {transform_indices = @transform_1, window_bounds = array<i64: 8, 128>}, {transform_indices = @transform_2, window_bounds = array<i64: 1, 1, 8>}]} {
    %c0_i32 = arith.constant 0 : i32
    %0 = arith.cmpi eq, %arg1, %c0_i32 : i32
    %1 = arith.extui %0 : i1 to i32
    %c0_i32_0 = arith.constant 0 : i32
    %2 = arith.cmpi ne, %1, %c0_i32_0 : i32
    scf.if %2 {
      %cst_25 = arith.constant 0xFF800000 : f32
      %35 = vector.broadcast %cst_25 : f32 to vector<8x1xf32>
      %c0_26 = arith.constant 0 : index
      %c0_27 = arith.constant 0 : index
      %36 = vector.load %arg5[%c0_26, %c0_27] : memref<8x1xf32, #tpu.memory_space<vmem>>, vector<8x1xf32>
      tpu.vector_store %arg5[%c0_26, %c0_27], %35 {strides = array<i32>} : memref<8x1xf32, #tpu.memory_space<vmem>>, vector<8x1xf32>,
      %cst_28 = arith.constant 0.000000e+00 : f32
      %37 = vector.broadcast %cst_28 : f32 to vector<8x1xf32>
      %c0_29 = arith.constant 0 : index
      %c0_30 = arith.constant 0 : index
      %38 = vector.load %arg6[%c0_29, %c0_30] : memref<8x1xf32, #tpu.memory_space<vmem>>, vector<8x1xf32>
      tpu.vector_store %arg6[%c0_29, %c0_30], %37 {strides = array<i32>} : memref<8x1xf32, #tpu.memory_space<vmem>>, vector<8x1xf32>,
      %cst_31 = arith.constant 0.000000e+00 : f32
      %39 = vector.broadcast %cst_31 : f32 to vector<8x1xf32>
      %c0_32 = arith.constant 0 : index
      %c0_33 = arith.constant 0 : index
      %40 = vector.load %arg7[%c0_32, %c0_33] : memref<8x1xf32, #tpu.memory_space<vmem>>, vector<8x1xf32>
      tpu.vector_store %arg7[%c0_32, %c0_33], %39 {strides = array<i32>} : memref<8x1xf32, #tpu.memory_space<vmem>>, vector<8x1xf32>,
      %cst_34 = arith.constant 0.000000e+00 : f32
      %41 = vector.broadcast %cst_34 : f32 to vector<8x1xf32>
      %c0_35 = arith.constant 0 : index
      %c0_36 = arith.constant 0 : index
      %42 = vector.load %arg8[%c0_35, %c0_36] : memref<8x1xf32, #tpu.memory_space<vmem>>, vector<8x1xf32>
      tpu.vector_store %arg8[%c0_35, %c0_36], %41 {strides = array<i32>} : memref<8x1xf32, #tpu.memory_space<vmem>>, vector<8x1xf32>,
    } else {
    }
    %c0 = arith.constant 0 : index
    %c0_1 = arith.constant 0 : index
    %3 = vector.load %arg2[%c0, %c0_1] : memref<8x128xf32, #tpu.memory_space<vmem>>, vector<8x128xf32>
    %c0_2 = arith.constant 0 : index
    %c0_3 = arith.constant 0 : index
    %4 = vector.load %arg3[%c0_2, %c0_3] : memref<8x128xf32, #tpu.memory_space<vmem>>, vector<8x128xf32>
    %cst = arith.constant dense<0xFF800000> : vector<8xf32>
    %5 = vector.multi_reduction <maximumf>, %3, %cst [1] : vector<8x128xf32> to vector<8xf32>
    %6 = vector.shape_cast %5 : vector<8xf32> to vector<8x1xf32>
    %7 = arith.mulf %4, %3 : vector<8x128xf32>
    %cst_4 = arith.constant dense<0.000000e+00> : vector<8xf32>
    %8 = vector.multi_reduction <add>, %4, %cst_4 [1] : vector<8x128xf32> to vector<8xf32>
    %9 = vector.shape_cast %8 : vector<8xf32> to vector<8x1xf32>
    %c0_5 = arith.constant 0 : index
    %c0_6 = arith.constant 0 : index
    %10 = vector.load %arg5[%c0_5, %c0_6] : memref<8x1xf32, #tpu.memory_space<vmem>>, vector<8x1xf32>
    %11 = arith.maximumf %10, %6 : vector<8x1xf32>
    %12 = arith.subf %10, %11 : vector<8x1xf32>
    %13 = math.exp %12 : vector<8x1xf32>
    %14 = vector.broadcast %11 : vector<8x1xf32> to vector<8x128xf32>
    %15 = arith.subf %3, %14 : vector<8x128xf32>
    %16 = math.exp %15 : vector<8x128xf32>
    %cst_7 = arith.constant dense<0.000000e+00> : vector<8xf32>
    %17 = vector.multi_reduction <add>, %16, %cst_7 [1] : vector<8x128xf32> to vector<8xf32>
    %18 = vector.shape_cast %17 : vector<8xf32> to vector<8x1xf32>
    %c0_8 = arith.constant 0 : index
    %c0_9 = arith.constant 0 : index
    %19 = vector.load %arg6[%c0_8, %c0_9] : memref<8x1xf32, #tpu.memory_space<vmem>>, vector<8x1xf32>
    %20 = arith.mulf %13, %19 : vector<8x1xf32>
    %21 = arith.addf %20, %18 : vector<8x1xf32>
    %c0_10 = arith.constant 0 : index
    %c0_11 = arith.constant 0 : index
    %22 = vector.load %arg6[%c0_10, %c0_11] : memref<8x1xf32, #tpu.memory_space<vmem>>, vector<8x1xf32>
    tpu.vector_store %arg6[%c0_10, %c0_11], %21 {strides = array<i32>} : memref<8x1xf32, #tpu.memory_space<vmem>>, vector<8x1xf32>,
    %c0_12 = arith.constant 0 : index
    %c0_13 = arith.constant 0 : index
    %23 = vector.load %arg7[%c0_12, %c0_13] : memref<8x1xf32, #tpu.memory_space<vmem>>, vector<8x1xf32>
    %24 = arith.addf %23, %9 : vector<8x1xf32>
    %c0_14 = arith.constant 0 : index
    %c0_15 = arith.constant 0 : index
    %25 = vector.load %arg7[%c0_14, %c0_15] : memref<8x1xf32, #tpu.memory_space<vmem>>, vector<8x1xf32>
    tpu.vector_store %arg7[%c0_14, %c0_15], %24 {strides = array<i32>} : memref<8x1xf32, #tpu.memory_space<vmem>>, vector<8x1xf32>,
    %c0_16 = arith.constant 0 : index
    %c0_17 = arith.constant 0 : index
    %26 = vector.load %arg8[%c0_16, %c0_17] : memref<8x1xf32, #tpu.memory_space<vmem>>, vector<8x1xf32>
    %cst_18 = arith.constant dense<0.000000e+00> : vector<8xf32>
    %27 = vector.multi_reduction <add>, %7, %cst_18 [1] : vector<8x128xf32> to vector<8xf32>
    %28 = vector.shape_cast %27 : vector<8xf32> to vector<8x1xf32>
    %29 = arith.addf %26, %28 : vector<8x1xf32>
    %c0_19 = arith.constant 0 : index
    %c0_20 = arith.constant 0 : index
    %30 = vector.load %arg8[%c0_19, %c0_20] : memref<8x1xf32, #tpu.memory_space<vmem>>, vector<8x1xf32>
    tpu.vector_store %arg8[%c0_19, %c0_20], %29 {strides = array<i32>} : memref<8x1xf32, #tpu.memory_space<vmem>>, vector<8x1xf32>,
    %c0_21 = arith.constant 0 : index
    %c0_22 = arith.constant 0 : index
    %31 = vector.load %arg5[%c0_21, %c0_22] : memref<8x1xf32, #tpu.memory_space<vmem>>, vector<8x1xf32>
    tpu.vector_store %arg5[%c0_21, %c0_22], %11 {strides = array<i32>} : memref<8x1xf32, #tpu.memory_space<vmem>>, vector<8x1xf32>,
    %c0_i32_23 = arith.constant 0 : i32
    %32 = arith.cmpi eq, %arg1, %c0_i32_23 : i32
    %33 = arith.extui %32 : i1 to i32
    %c0_i32_24 = arith.constant 0 : i32
    %34 = arith.cmpi ne, %33, %c0_i32_24 : i32
    scf.if %34 {
      %c0_25 = arith.constant 0 : index
      %c0_26 = arith.constant 0 : index
      %35 = vector.load %arg5[%c0_25, %c0_26] : memref<8x1xf32, #tpu.memory_space<vmem>>, vector<8x1xf32>
      %c0_27 = arith.constant 0 : index
      %c0_28 = arith.constant 0 : index
      %36 = vector.load %arg6[%c0_27, %c0_28] : memref<8x1xf32, #tpu.memory_space<vmem>>, vector<8x1xf32>
      %37 = math.log %36 : vector<8x1xf32>
      %38 = arith.addf %35, %37 : vector<8x1xf32>
      %c0_29 = arith.constant 0 : index
      %c0_30 = arith.constant 0 : index
      %39 = vector.load %arg7[%c0_29, %c0_30] : memref<8x1xf32, #tpu.memory_space<vmem>>, vector<8x1xf32>
      %40 = arith.mulf %39, %38 : vector<8x1xf32>
      %c0_31 = arith.constant 0 : index
      %c0_32 = arith.constant 0 : index
      %41 = vector.load %arg8[%c0_31, %c0_32] : memref<8x1xf32, #tpu.memory_space<vmem>>, vector<8x1xf32>
      %42 = arith.subf %40, %41 : vector<8x1xf32>
      %43 = vector.shape_cast %42 : vector<8x1xf32> to vector<8xf32>
      %44 = vector.shape_cast %43 : vector<8xf32> to vector<1x1x8xf32>
      %c0_33 = arith.constant 0 : index
      %c0_34 = arith.constant 0 : index
      %c0_35 = arith.constant 0 : index
      %45 = vector.load %arg4[%c0_33, %c0_34, %c0_35] : memref<1x1x8xf32, #tpu.memory_space<vmem>>, vector<1x1x8xf32>
      tpu.vector_store %arg4[%c0_33, %c0_34, %c0_35], %44 {strides = array<i32>} : memref<1x1x8xf32, #tpu.memory_space<vmem>>, vector<1x1x8xf32>,
    } else {
    }
    return
  }
  func.func @transform_0(%arg0: i32, %arg1: i32) -> (i32, i32) {
    %c0_i32 = arith.constant 0 : i32
    return %arg0, %arg1 : i32, i32
  }
  func.func @transform_1(%arg0: i32, %arg1: i32) -> (i32, i32) {
    %c0_i32 = arith.constant 0 : i32
    return %arg0, %arg1 : i32, i32
  }
  func.func @transform_2(%arg0: i32, %arg1: i32) -> (i32, i32, i32) {
    %c0_i32 = arith.constant 0 : i32
    %c0_i32_0 = arith.constant 0 : i32
    %c0_i32_1 = arith.constant 0 : i32
    return %arg0, %c0_i32, %c0_i32_0 : i32, i32, i32
  }
}

</mosaic_0001>

<bundles_post_ra>
// kernel: cross_entropy_with_logits.1
= control target key start
LH: loop header
LB: loop body
LE: loop exit
PB: predicated region body
PF: predicated region fallthrough
CT: control target
= control target key end

     0   :  { %7 = vsyncpa [#allocation7], 0  ;;  %s724_s0 = inlined_call_operand.hbm [shape: f32[16,128], index: 0, kind: input, shape index: {}]   ;;  %s725_s1 = inlined_call_operand.hbm [shape: f32[16,128], index: 1, kind: input, shape index: {}]   ;;  %s726_s2 = inlined_call_operand.vmem [shape: f32[2,1,8], index: 2, kind: output, shape index: {}]  }
   0x1   :  { %9 = vsyncpa [#allocation7 + $0x1], 0 }
   0x2   :  { %10 = vsyncpa [#allocation9], 0 }
   0x3   :  { %12 = vsyncpa [#allocation9 + $0x1], 0  ;;  %s590_s9 = smov 0   ;;  %s592_s10 = smov 0  }
   0x4   :  { %s594_s11 = smov 0   ;;  %s596_s12 = smov 0  }
   0x5   :  { %s598_s13 = smov 0   ;;  %s600_s14 = smov 0  }
   0x6 LB: > { %s374_s15 = sadd.s32 4294967295, %s568_s14   ;;  %s30_s16 = sadd.s32 1, %s564_s13  ;;  %s568_s14 = sphi %s600_s14, %s18_s14   ;;  %s564_s13 = sphi %s598_s13, %s735_s13   ;;  %s560_s12 = sphi %s596_s12, %s734_s12   ;;  %s556_s11 = sphi %s594_s11, %s733_s11   ;;  %s552_s10 = sphi %s592_s10, %s732_s10   ;;  %s548_s9 = sphi %s590_s9, %s731_s9  }
   0x7   : > { %p32_p0 = scmp.ge.s32.totalorder %s30_s16, 2  ;;  %s39_s17 = sadd.s32 1, %s556_s11 }
   0x8   : > { %p46_p1 = scmp.ne.s32.totalorder %s556_s11, %s552_s10  ;;  %p47_p2 = scmp.eq.s32.totalorder %s568_s14, 0 }
   0x9   : > { %s737_s16 = smov (%p32_p0, %s30_s16), 0  ;;  %p52_p4 = scmp.ne.s32.totalorder %s552_s10, %s548_s9 }
   0xa   : > { %p626_p3 = por %p47_p2, %p46_p1  ;;  %s34_s19 = ssub.s32 %s564_s13, %s737_s16 }
   0xb   : > { %p53_p5 = scmp.eq.s32.totalorder %s374_s15, 0  ;;  %p37_p6 = scmp.eq.s32.totalorder %s34_s19, 0 }
   0xc   : > { %p398_p8 = scmp.lt.s32.totalorder %s568_s14, 2  ;;  %s642_s22 = sand.u32 1, %s556_s11  }
   0xd   : > { %p633_p7 = por %p53_p5, %p52_p4  ;;  %s379_s23 = sshll.u32 %s564_s13, 7 }
   0xe   : > { %s639_s21 = scalar_select %p37_p6, %s556_s11, %s39_s17  }
   0xf   : > { %s378_s24 = sshll.u32 %s642_s22, 3  ;;  %s140_s27 = scalar_lea.hbm %s724_s0, %s379_s23 }
  0x10   : > { %s134_s28 = scalar_lea.vmem [#allocation6], %s378_s24  ;;  %p651_p9 = pnand %p398_p8, %p626_p3 }
  0x11   : > { %s142_s29 = sshll.u32 %s134_s28, 4  ;;  %p382_p10 = scmp.ge.s32.totalorder %s568_s14, 1  ;;  %s143_s29 = int_to_ptr.vmem [resolvable:$true] %s142_s29 }
  0x12   : > { %p166_p11 = scmp.lt.s32.totalorder %s568_s14, 3  ;;  %s131_s3 = scalar_lea.sflag [#allocation7], %s642_s22 }
  0x13   : > { %p460_p12 = pneg %p651_p9  ;;  %s471_s4 = scalar_lea.vmem %s143_s29, 128 }
  0x14   : > { %p472_p13 = scmp.ne.s32.totalorder %s143_s29, %s471_s4  ;;  %s570_s5 = smov [#allocation6]  }
  0x15   : > { %s476_s6 = sshll.u32 %s570_s5, 4  ;;  %s477_s6 = int_to_ptr.vmem [resolvable:$false] %s476_s6 }
  0x16   : > { %p474_p0 = pnand %p472_p13, %p460_p12  ;;  %s478_s7 = scalar_lea.vmem %s477_s6, 256 }
  0x17   : > { %p479_p2 = scmp.lt.s32.totalorder %s143_s29, %s477_s6  ;;  %p480_p3 = scmp.lt.s32.totalorder %s478_s7, %s471_s4 }
  0x18   : > { %p475_p1 = pneg %p474_p0 }
  0x19   : > { %p481_p4 = por %p480_p3, %p479_p2 }
  0x1b   : > { %p482_p5 = pnand %p481_p4, %p475_p1 }
  0x1d   : > { %485 = shalt.err (!%p482_p5)
}
  0x1e   : > { %394 = dma.hbm_to_vmem [thread:$0]  (!%p651_p9), %s140_s27, 128, %s143_s29, %s131_s3  }
  0x1f   : > { %p669_p6 = pnand %p382_p10, %p166_p11  ;;  %s159_s17 = scalar_lea.hbm %s725_s1, %s379_s23 }
  0x20   : > { %s153_s18 = scalar_lea.vmem [#allocation8], %s378_s24  ;;  %s150_s25 = scalar_lea.sflag [#allocation9], %s642_s22 }
  0x21   : > { %s161_s19 = sshll.u32 %s153_s18, 4  ;;  %s571_s27 = smov [#allocation8]   ;;  %s162_s19 = int_to_ptr.vmem [resolvable:$true] %s161_s19 }
  0x22   : > { %s499_s26 = scalar_lea.vmem %s162_s19, 128  ;;  %s504_s28 = sshll.u32 %s571_s27, 4  ;;  %s505_s28 = int_to_ptr.vmem [resolvable:$false] %s504_s28 }
  0x23   : > { %p500_p8 = scmp.ne.s32.totalorder %s162_s19, %s499_s26  ;;  %s506_s29 = scalar_lea.vmem %s505_s28, 256 }
  0x24   : > { %p507_p10 = scmp.lt.s32.totalorder %s162_s19, %s505_s28  ;;  %p508_p11 = scmp.lt.s32.totalorder %s506_s29, %s499_s26 }
  0x25   : > { %p502_p13 = pnand %p500_p8, %p460_p12 }
  0x26   : > { %p509_p1 = por %p508_p11, %p507_p10 }
  0x27   : > { %p503_p0 = pneg %p502_p13 }
  0x29   : > { %p510_p2 = pnand %p509_p1, %p503_p0 }
  0x2b   : > { %513 = shalt.err (!%p510_p2)
}
  0x2c   : > { %397 = dma.hbm_to_vmem [thread:$0]  (!%p651_p9), %s159_s17, 128, %s162_s19, %s150_s25  }
  0x2d   : > { %170 = sbr.rel (%p669_p6) target bundleno = 633 (0x279), region = 28  ;;  %s172_s22 = sand.u32 (!%p669_p6), 1, %s552_s10  }
  0x2e   : > { %s383_s23 = sshll.u32 (!%p669_p6), %s172_s22, 3  ;;  %s173_s24 = scalar_lea.sflag (!%p669_p6), [#allocation7], %s172_s22 }
  0x2f   : > { %s176_s3 = scalar_lea.vmem (!%p669_p6), [#allocation6], %s383_s23 }
  0x32   : > { %539 = dma.done.wait (%p633_p7), %s173_s24, 128  }
  0x33   : > { %541 = vsyncadd (%p633_p7), %s173_s24, 4294967168  ;;  %s182_s4 = scalar_lea.sflag [#allocation9], %s172_s22  ;;  %s185_s5 = scalar_lea.vmem [#allocation8], %s383_s23 }
  0x34   : > { %543 = dma.done.wait (%p633_p7), %s182_s4, 128  }
  0x35   : > { %545 = vsyncadd (%p633_p7), %s182_s4, 4294967168  ;;  %vm216_vm0 = vcmask 7168   ;;  %v572_v0 = vmov -inf   ;;  %v221_v1 = vld [vmem:[%s176_s3] sm:$0xff]  ;;  %v573_v2 = vmov 0   ;;  %v574_v3 = vmov 0.0  }
  0x36   : > { %217 = vst.msk [vmem:[#allocation2] sm:$0xff] %vm216_vm0, %v572_v0  ;;  %223 = vmax.xlane.f32.xlu0 %v221_v1  ;;  %451 = vset.pattern.permute.xlu1 %v573_v2  ;;  %218 = vst.msk [vmem:[#allocation3] sm:$0xff] %vm216_vm0, %v574_v3  ;;  %v222_v12 = vld [vmem:[%s185_s5] sm:$0xff]  ;;  %v273_v35 = vlaneseq  ;;  %p209_p7 = scmp.lt.s32.totalorder %s560_s12, 1  ;;  %vm280_vm1 = vcmask 57344  }
  0x37   : > { %450 = vset.pattern.permute.xlu0 %v573_v2  ;;  %219 = vst.msk [vmem:[#allocation4] sm:$0xff] %vm216_vm0, %v574_v3  ;;  %220 = vst.msk [vmem:[#allocation5] sm:$0xff] %vm216_vm0, %v574_v3  ;;  %v225_v13 = vmul.f32 %v222_v12, %v221_v1 }
  0x38   : > { %v274_v36 = vand.u32 127, %v273_v35  ;;  %v276_v37 = vshrl.u32 %v273_v35, 7  ;;  %s739_s12 = smov (!%p209_p7, %s560_s12), 1 }
  0x39   : > { %s211_s6 = scalar_lea.vmem %s726_s2, %s739_s12 }
  0x3a   : > { %v277_v38 = vsub.s32 %v274_v36, %v276_v37 }
  0x3d   : > { %v228_v4 = vld [vmem:[#allocation2] sm:$0xff]  ;;  %v243_v16 = vld [vmem:[#allocation3] sm:$0xff] }
  0x3e   : > { %v248_v20 = vld [vmem:[#allocation4] sm:$0xff]  ;;  %v251_v23 = vld [vmem:[#allocation5] sm:$0xff] }
  0xbf   : > { %v224_v5 = vpop.xlane.xlu0 %223 }
  0xc0   : > { %v229_v6 = vmax.f32 %v228_v4, %v224_v5 }
  0xc2   : > { %v230_v7 = vsub.f32 %v228_v4, %v229_v6  ;;  %256 = vst.msk [vmem:[#allocation2] sm:$0xff] %vm216_vm0, %v229_v6  ;;  %235 = vperm.xlu0 %450, %v229_v6  }
  0xc4   : > { %v231_v14 = vmul.f32 1.442695, %v230_v7 }
  0xc9   : > { %v260_v29 = vld [vmem:[#allocation2] sm:$0xff] }
 0x13d   : > { %v236_v8 = vpop.permute.xlu0 %235 }
 0x13e   : > { %v238_v9 = vsub.f32 %v221_v1, %v236_v8 }
 0x140   : > { %v239_v10 = vmul.f32 1.442695, %v238_v9 }
 0x142   : > { %452 = vpow2.f32 %v239_v10 }
 0x143   : > { %454 = vpow2.f32 %v231_v14 }
 0x14f   : > { %v453_v11 = vpop.eup %452 }
 0x150   : > { %241 = vadd.xlane.f32.xlu1 %v453_v11  ;;  %v455_v15 = vpop.eup %454 }
 0x151   : > { %v244_v17 = vmul.f32 %v455_v15, %v243_v16 }
 0x154   : > { %226 = vadd.xlane.f32.xlu1 %v222_v12 }
 0x158   : > { %252 = vadd.xlane.f32.xlu1 %v225_v13 }
 0x1d9   : > { %v242_v18 = vpop.xlane.xlu1 %241 }
 0x1da   : > { %v245_v19 = vadd.f32 %v244_v17, %v242_v18 }
 0x1dc   : > { %247 = vst.msk [vmem:[#allocation3] sm:$0xff] %vm216_vm0, %v245_v19 }
 0x1dd   : > { %v227_v21 = vpop.xlane.xlu1 %226 }
 0x1de   : > { %v249_v22 = vadd.f32 %v248_v20, %v227_v21 }
 0x1e0   : > { %250 = vst.msk [vmem:[#allocation4] sm:$0xff] %vm216_vm0, %v249_v22 }
 0x1e1   : > { %v253_v24 = vpop.xlane.xlu1 %252 }
 0x1e2   : > { %v254_v25 = vadd.f32 %v253_v24, %v251_v23 }
 0x1e3   : > { %v261_v26 = vld [vmem:[#allocation3] sm:$0xff] }
 0x1e4   : > { %255 = vst.msk [vmem:[#allocation5] sm:$0xff] %vm216_vm0, %v254_v25  ;;  %456 = vlog2.f32 %v261_v26 }
 0x1e7   : > { %v265_v31 = vld [vmem:[#allocation4] sm:$0xff] }
 0x1eb   : > { %v267_v32 = vld [vmem:[#allocation5] sm:$0xff] }
 0x1f1   : > { %v457_v27 = vpop.eup %456 }
 0x1f2   : > { %v263_v28 = vmul.f32 0.6931472, %v457_v27 }
 0x1f4   : > { %v264_v30 = vadd.f32 %v263_v28, %v260_v29 }
 0x1f6   : > { %v266_v33 = vmul.f32 %v265_v31, %v264_v30 }
 0x1f8   : > { %v268_v34 = vsub.f32 %v266_v33, %v267_v32 }
 0x1fa   : > { %271 = vperm.xlu1 %451, %v268_v34  }
 0x275   : > { %v272_v39 = vpop.permute.xlu1 %271 }
 0x276   : > { %v278_v40 = vrot.slane %v272_v39, %v277_v38 }
 0x278   : > { %281 = vst.msk [vmem:[%s211_s6] sm:$0x1] %vm280_vm1, %v278_v40 }
 0x279 PF: > { %s18_s14 = sadd.s32 1, %s568_s14   ;;  %s731_s9 = smov %s552_s10 }
 0x27a   : > { %p15_p9 = scmp.ge.s32.totalorder %s18_s14, 4   ;;  %s732_s10 = smov %s556_s11 }
 0x27b   : > { %s733_s11 = smov %s639_s21  ;;  %s734_s12 = smov %s564_s13 }
 0x27c   : > { %s735_s13 = smov %s737_s16  ;;  %17 = sbr.rel (!%p15_p9) target bundleno = 6 (0x6), region = 89 }
 0x281   :  { %299 = vsyncpa [#allocation7], 1 }
 0x282   :  { %301 = vsyncpa [#allocation7 + $0x1], 1 }
 0x283   :  { %302 = vsyncpa [#allocation9], 1 }
 0x284   :  { %304 = vsyncpa [#allocation9 + $0x1], 1 }

</bundles_post_ra>
